<compile_context>
chip_gen: v5e
topology: v5e:2x2
jax: 0.10.0
libtpu: 0.0.40
codegen_flags: <defaults>
</compile_context>

<pallas_src>
import functools

import jax
import jax.numpy as jnp
from jax.experimental import pallas as pl
from jax.experimental.pallas import tpu as pltpu


# ---------------------------------------------------------------------------
# Kernels
# ---------------------------------------------------------------------------
def _proj_head_kernel_single_k(x_ref, w_ref, b_ref, o_ref):
    # x_ref: (tb, K), w_ref: (K, N_pad) [resident], b_ref: (1, N_pad)
    z = jnp.dot(x_ref[...], w_ref[...], preferred_element_type=jnp.float32)
    z = z + b_ref[...].astype(jnp.float32)
    # F.normalize(z, p=2, dim=-1): z / max(||z||, eps), eps = 1e-12
    #   == z * rsqrt(max(||z||^2, eps^2)).
    sq = jnp.sum(z * z, axis=-1, keepdims=True)
    inv = jax.lax.rsqrt(jnp.maximum(sq, jnp.float32(1e-24)))
    o_ref[...] = (z * inv).astype(o_ref.dtype)


def _proj_head_kernel_multi_k(x_ref, w_ref, b_ref, o_ref, acc_ref):
    # x_ref: (tb, tk), w_ref: (tk, N_pad), b_ref: (1, N_pad)
    # o_ref: (tb, N_pad), acc_ref: (tb, N_pad) f32 scratch (resident over K axis)
    k = pl.program_id(1)

    @pl.when(k == 0)
    def _():
        acc_ref[...] = jnp.zeros_like(acc_ref)

    acc_ref[...] += jnp.dot(
        x_ref[...], w_ref[...], preferred_element_type=jnp.float32
    )

    @pl.when(k == pl.num_programs(1) - 1)
    def _():
        z = acc_ref[...] + b_ref[...].astype(jnp.float32)
        sq = jnp.sum(z * z, axis=-1, keepdims=True)
        inv = jax.lax.rsqrt(jnp.maximum(sq, jnp.float32(1e-24)))
        o_ref[...] = (z * inv).astype(o_ref.dtype)


# ---------------------------------------------------------------------------
# Wrapper helpers
# ---------------------------------------------------------------------------
def _round_up(x, m):
    return ((x + m - 1) // m) * m


def _cdiv(a, b):
    return (a + b - 1) // b


def _sublane_pack(dtype):
    nbytes = jnp.dtype(dtype).itemsize
    if nbytes >= 4:
        return 8
    if nbytes == 2:
        return 16
    return 32


@functools.lru_cache(maxsize=1)
def _vmem_limit_bytes():
    """Generation-aware scoped-VMEM limit (v5e/v6e ~96 MiB, v7x ~48 MiB)."""
    phys = 64 * 1024 * 1024  # conservative fallback = v7x physical
    try:
        info = pltpu.get_tpu_info()
        phys = int(getattr(info, "vmem_capacity_bytes", phys))
    except Exception:
        pass
    return max(32 * 1024 * 1024, min(int(phys * 3 // 4), 100 * 1024 * 1024))


# ---------------------------------------------------------------------------
# Public entry point
# ---------------------------------------------------------------------------
@functools.partial(
    jax.jit,
    static_argnames=("block_b", "block_k", "min_k_blocks", "compute_dtype"),
)
def linear_projection_head(
    x, w_t, b, *, block_b=512, block_k=512, min_k_blocks=1, compute_dtype=None
):
    """x: (B, input_dim), w_t: (input_dim, output_dim), b: (1, output_dim)."""
    B, K = x.shape
    assert w_t.shape[0] == K
    N = w_t.shape[1]
    b = b.reshape(1, N)
    out_dtype = x.dtype

    # Optional bf16 MXU feeding (f32 accumulation kept); off by default to
    # exactly match the f32 reference.
    if compute_dtype is not None:
        x = x.astype(compute_dtype)
        w_t = w_t.astype(compute_dtype)
        b = b.astype(compute_dtype)

    xb = jnp.dtype(x.dtype).itemsize
    wb = jnp.dtype(w_t.dtype).itemsize
    ob = jnp.dtype(out_dtype).itemsize
    pack = _sublane_pack(x.dtype)

    N_pad = _round_up(N, 128)  # lane-dense stores; zero cols don't affect norm

    vmem_limit = _vmem_limit_bytes()
    budget = int(vmem_limit * 0.8)  # headroom for compiler temporaries

    rB = _round_up(B, pack)

    # --- Batch tiling: balanced, sublane-pack aligned tiles; keep the
    # "parallel" axis >= 2 steps when possible (v7x has 2 TensorCores).
    def batch_tiling(tb_cap):
        nb = _cdiv(rB, max(tb_cap, pack))
        if nb < 2 and rB >= 2 * pack:
            nb = 2
        tb = _round_up(_cdiv(rB, nb), pack)
        nb = _cdiv(rB, tb)
        return nb, tb

    # --- K tiling: weight-resident single block when it fits; otherwise
    # balanced 128-aligned K tiles; force >=2 K blocks when there is only one
    # batch tile so the weight DMA overlaps MXU work.
    def k_tiling(nb, tb):
        foot_single = (
            2 * tb * K * xb          # x double-buffered
            + 2 * K * N_pad * wb     # weight (resident, still 2 bufs allocated)
            + 2 * N_pad * wb         # bias
            + 2 * tb * N_pad * ob    # output double-buffered
        )
        weight_bytes = K * N_pad * wb
        prefer_split = (nb < 2) and (K >= 256)
        single_ok = (
            min_k_blocks <= 1
            and not prefer_split
            and foot_single <= budget
            and 3 * weight_bytes <= budget
        )
        if single_ok:
            return 1, K, K, foot_single

        num_k = max(_cdiv(K, block_k), min_k_blocks, 2 if prefer_split else 1)
        num_k = max(1, min(num_k, _cdiv(K, 128)))
        while True:
            tk = _round_up(_cdiv(K, num_k), 128)
            foot = (
                2 * tb * tk * xb
                + 2 * tk * N_pad * wb
                + 2 * N_pad * wb
                + 2 * tb * N_pad * ob
                + tb * N_pad * 4     # f32 accumulator scratch
            )
            if foot <= budget or tk <= 128:
                return num_k, tk, num_k * tk, foot
            num_k += 1

    nb, tb = batch_tiling(min(block_b, rB))
    num_k, tk, K_pad, foot = k_tiling(nb, tb)
    # Last resort for very large output_dim: halve tb (tk already minimal).
    # TODO(synk): an N grid axis with a two-pass normalize would avoid this.
    while foot > budget and tb > pack:
        tb = _round_up(max(tb // 2, pack), pack)
        nb = _cdiv(rB, tb)
        num_k, tk, K_pad, foot = k_tiling(nb, tb)

    B_pad = nb * tb

    # Zero padding: padded K rows/cols contribute nothing to the matmul,
    # padded output columns are exactly 0 so the L2 norm is unchanged.
    x_p = x if (B_pad == B and K_pad == K) else jnp.pad(
        x, ((0, B_pad - B), (0, K_pad - K)))
    w_p = w_t if (K_pad == K and N_pad == N) else jnp.pad(
        w_t, ((0, K_pad - K), (0, N_pad - N)))
    b_p = b if N_pad == N else jnp.pad(b, ((0, 0), (0, N_pad - N)))

    if num_k == 1:
        # Weight-resident fast path: constant w/b index maps -> single HBM read
        # of the weight for the whole grid; no accumulator scratch.
        out = pl.pallas_call(
            _proj_head_kernel_single_k,
            out_shape=jax.ShapeDtypeStruct((B_pad, N_pad), out_dtype),
            grid_spec=pltpu.PrefetchScalarGridSpec(
                num_scalar_prefetch=0,
                grid=(nb,),
                in_specs=[
                    pl.BlockSpec((tb, K_pad), lambda i: (i, 0)),
                    pl.BlockSpec((K_pad, N_pad), lambda i: (0, 0)),
                    pl.BlockSpec((1, N_pad), lambda i: (0, 0)),
                ],
                out_specs=pl.BlockSpec((tb, N_pad), lambda i: (i, 0)),
            ),
            compiler_params=pltpu.CompilerParams(
                dimension_semantics=("parallel",),
                vmem_limit_bytes=vmem_limit,
            ),
        )(x_p, w_p, b_p)
    else:
        out = pl.pallas_call(
            _proj_head_kernel_multi_k,
            out_shape=jax.ShapeDtypeStruct((B_pad, N_pad), out_dtype),
            grid_spec=pltpu.PrefetchScalarGridSpec(
                num_scalar_prefetch=0,
                grid=(nb, num_k),
                in_specs=[
                    pl.BlockSpec((tb, tk), lambda i, k: (i, k)),
                    pl.BlockSpec((tk, N_pad), lambda i, k: (k, 0)),
                    pl.BlockSpec((1, N_pad), lambda i, k: (0, 0)),
                ],
                out_specs=pl.BlockSpec((tb, N_pad), lambda i, k: (i, 0)),
                scratch_shapes=[pltpu.VMEM((tb, N_pad), jnp.float32)],
            ),
            compiler_params=pltpu.CompilerParams(
                dimension_semantics=("parallel", "arbitrary"),
                vmem_limit_bytes=vmem_limit,
            ),
        )(x_p, w_p, b_p)

    return out[:B, :N]


# ---------------------------------------------------------------------------
# Params / reference / self-test
# ---------------------------------------------------------------------------
def init_params(key, input_dim, output_dim, dtype=jnp.float32):
    """Deterministic init mimicking nn.Linear defaults (uniform +/- 1/sqrt(fan_in))."""
    kw, kb = jax.random.split(key)
    bound = 1.0 / (input_dim ** 0.5)
    # PyTorch stores weight as (output_dim, input_dim); we keep the transposed
    # (input_dim, output_dim) layout for the kernel.
    w_t = jax.random.uniform(kw, (input_dim, output_dim), dtype, -bound, bound)
    b = jax.random.uniform(kb, (1, output_dim), dtype, -bound, bound)
    return w_t, b


def _reference(x, w_t, b):
    z = x @ w_t + b
    return z / jnp.maximum(
        jnp.sqrt(jnp.sum(z * z, axis=-1, keepdims=True)), 1e-12
    )


if __name__ == "__main__":
    key = jax.random.PRNGKey(0)
    k_x, k_p, k_x2, k_p2, k_x3, k_p3, k_x4, k_p4 = jax.random.split(key, 8)

    # Case 1: small, "nice" shapes — weight-resident single-K fast path.
    B, input_dim, output_dim = 16, 32, 64
    x = jax.random.normal(k_x, (B, input_dim), jnp.float32)
    w_t, b = init_params(k_p, input_dim, output_dim)
    z = linear_projection_head(x, w_t, b)
    jax.block_until_ready(z)
    assert z.shape == (B, output_dim)
    assert jnp.allclose(z, _reference(x, w_t, b), atol=2e-5, rtol=2e-5)

    # Case 2: ragged batch / non-multiple-of-128 output (padding + slice).
    B2, in2, out2 = 20, 48, 100
    x2 = jax.random.normal(k_x2, (B2, in2), jnp.float32)
    w2, b2 = init_params(k_p2, in2, out2)
    z2 = linear_projection_head(x2, w2, b2)
    jax.block_until_ready(z2)
    assert z2.shape == (B2, out2)
    assert jnp.allclose(z2, _reference(x2, w2, b2), atol=2e-5, rtol=2e-5)

    # Case 3: force the multi-K accumulator path (balanced 128-aligned K tiles).
    B3, in3, out3 = 16, 640, 64
    x3 = jax.random.normal(k_x3, (B3, in3), jnp.float32)
    w3, b3 = init_params(k_p3, in3, out3)
    z3 = linear_projection_head(x3, w3, b3, block_k=256, min_k_blocks=3)
    jax.block_until_ready(z3)
    assert z3.shape == (B3, out3)
    assert jnp.allclose(z3, _reference(x3, w3, b3), atol=2e-5, rtol=2e-5)

    # Case 4: single batch tile -> K automatically split for DMA/compute overlap.
    B4, in4, out4 = 8, 512, 64
    x4 = jax.random.normal(k_x4, (B4, in4), jnp.float32)
    w4, b4 = init_params(k_p4, in4, out4)
    z4 = linear_projection_head(x4, w4, b4)
    jax.block_until_ready(z4)
    assert z4.shape == (B4, out4)
    assert jnp.allclose(z4, _reference(x4, w4, b4), atol=2e-5, rtol=2e-5)

    print("KERNEL_OK")
</pallas_src>

<mosaic_0001>
module attributes {stable_mosaic.version = 11 : i64} {
  func.func @_proj_head_kernel_single_k(%arg0: i32, %arg1: memref<8x32xf32, #tpu.memory_space<vmem>>, %arg2: memref<32x128xf32, #tpu.memory_space<vmem>>, %arg3: memref<1x128xf32, #tpu.memory_space<vmem>>, %arg4: memref<8x128xf32, #tpu.memory_space<vmem>>) attributes {dimension_semantics = [#tpu.dimension_semantics<parallel>], iteration_bounds = array<i64: 2>, scalar_prefetch = 0 : i64, scratch_operands = 0 : i64, tpu.core_type = #tpu.core_type<tc>, window_params = [{transform_indices = @transform_0, window_bounds = array<i64: 8, 32>}, {pipeline_mode = #tpu.pipeline_mode<synchronous>, transform_indices = @transform_1, window_bounds = array<i64: 32, 128>}, {pipeline_mode = #tpu.pipeline_mode<synchronous>, transform_indices = @transform_2, window_bounds = array<i64: 1, 128>}, {transform_indices = @transform_3, window_bounds = array<i64: 8, 128>}]} {
    %c0 = arith.constant 0 : index
    %c0_0 = arith.constant 0 : index
    %0 = vector.load %arg1[%c0, %c0_0] : memref<8x32xf32, #tpu.memory_space<vmem>>, vector<8x32xf32>
    %c0_1 = arith.constant 0 : index
    %c0_2 = arith.constant 0 : index
    %1 = vector.load %arg2[%c0_1, %c0_2] : memref<32x128xf32, #tpu.memory_space<vmem>>, vector<32x128xf32>
    %cst = arith.constant dense<0.000000e+00> : vector<8x128xf32>
    %2 = tpu.matmul %0, %1, %cst {dimension_numbers = #tpu.dot_dimension_numbers<[1], [0], [0], [1], [0, 0, 1, 1], [], []>} : vector<8x32xf32>, vector<32x128xf32>, vector<8x128xf32> -> vector<8x128xf32>
    %c0_3 = arith.constant 0 : index
    %c0_4 = arith.constant 0 : index
    %3 = vector.load %arg3[%c0_3, %c0_4] : memref<1x128xf32, #tpu.memory_space<vmem>>, vector<1x128xf32>
    %4 = vector.broadcast %3 : vector<1x128xf32> to vector<8x128xf32>
    %5 = arith.addf %2, %4 : vector<8x128xf32>
    %6 = arith.mulf %5, %5 : vector<8x128xf32>
    %cst_5 = arith.constant dense<0.000000e+00> : vector<8xf32>
    %7 = vector.multi_reduction <add>, %6, %cst_5 [1] : vector<8x128xf32> to vector<8xf32>
    %8 = vector.shape_cast %7 : vector<8xf32> to vector<8x1xf32>
    %cst_6 = arith.constant 1.000000e-24 : f32
    %9 = vector.broadcast %cst_6 : f32 to vector<8x1xf32>
    %10 = arith.maximumf %8, %9 : vector<8x1xf32>
    %11 = math.rsqrt %10 : vector<8x1xf32>
    %12 = vector.broadcast %11 : vector<8x1xf32> to vector<8x128xf32>
    %13 = arith.mulf %5, %12 : vector<8x128xf32>
    %c0_7 = arith.constant 0 : index
    %c0_8 = arith.constant 0 : index
    %14 = vector.load %arg4[%c0_7, %c0_8] : memref<8x128xf32, #tpu.memory_space<vmem>>, vector<8x128xf32>
    tpu.vector_store %arg4[%c0_7, %c0_8], %13 {strides = array<i32>} : memref<8x128xf32, #tpu.memory_space<vmem>>, vector<8x128xf32>,
    return
  }
  func.func @transform_0(%arg0: i32) -> (i32, i32) {
    %c0_i32 = arith.constant 0 : i32
    %c0_i32_0 = arith.constant 0 : i32
    return %arg0, %c0_i32 : i32, i32
  }
  func.func @transform_1(%arg0: i32) -> (i32, i32) {
    %c0_i32 = arith.constant 0 : i32
    %c0_i32_0 = arith.constant 0 : i32
    %c0_i32_1 = arith.constant 0 : i32
    return %c0_i32, %c0_i32_0 : i32, i32
  }
  func.func @transform_2(%arg0: i32) -> (i32, i32) {
    %c0_i32 = arith.constant 0 : i32
    %c0_i32_0 = arith.constant 0 : i32
    %c0_i32_1 = arith.constant 0 : i32
    return %c0_i32, %c0_i32_0 : i32, i32
  }
  func.func @transform_3(%arg0: i32) -> (i32, i32) {
    %c0_i32 = arith.constant 0 : i32
    %c0_i32_0 = arith.constant 0 : i32
    return %arg0, %c0_i32 : i32, i32
  }
}

</mosaic_0001>

<bundles_post_ra>
// kernel: linear_projection_head.1
= control target key start
LH: loop header
LB: loop body
LE: loop exit
PB: predicated region body
PF: predicated region fallthrough
CT: control target
= control target key end

     0   :  { %8 = vsyncpa [#allocation3], 0  ;;  %s527_s0 = inlined_call_operand.vmem [shape: f32[16,32], index: 0, kind: input, shape index: {}]   ;;  %s528_s1 = inlined_call_operand.vmem [shape: f32[32,128], index: 1, kind: input, shape index: {}]   ;;  %s529_s2 = inlined_call_operand.vmem [shape: f32[1,128], index: 2, kind: input, shape index: {}]   ;;  %s530_s3 = inlined_call_operand.hbm [shape: f32[16,128], index: 3, kind: output, shape index: {}]  }
   0x1   :  { %10 = vsyncpa [#allocation3 + $0x1], 0  ;;  %s427_s12 = smov 0   ;;  %s429_s13 = smov 0  }
   0x2   :  { %s431_s14 = smov 0   ;;  %s433_s15 = smov 0  }
   0x3 LB: > { %s448_s16 = sadd.s32 4294967295, %s405_s15   ;;  %s290_s17 = sadd.s32 4294967294, %s405_s15   ;;  %s405_s15 = sphi %s433_s15, %s536_s15   ;;  %s401_s14 = sphi %s431_s14, %s535_s14   ;;  %s397_s13 = sphi %s429_s13, %s534_s13   ;;  %s393_s12 = sphi %s427_s12, %s533_s12  }
   0x4   : > { %s452_s18 = sadd.s32 1, %s405_s15   ;;  %s91_s19 = sadd.s32 1, %s401_s14 }
   0x5   : > { %s88_s20 = ssub.s32 %s405_s15, %s452_s18  ;;  %p101_p0 = scmp.ne.s32.totalorder %s401_s14, %s397_s13 }
   0x6   : > { %p89_p1 = scmp.eq.s32.totalorder %s88_s20, 0  ;;  %p102_p2 = scmp.eq.s32.totalorder %s448_s16, 1 }
   0x7   : > { %p107_p3 = scmp.ne.s32.totalorder %s397_s13, %s393_s12  ;;  %p108_p4 = scmp.eq.s32.totalorder %s290_s17, 1 }
   0x8   : > { %s463_s21 = scalar_select %p89_p1, %s401_s14, %s91_s19  }
   0x9   : > { %p465_p5 = por %p102_p2, %p101_p0  ;;  %p469_p6 = por %p108_p4, %p107_p3 }
   0xa   : > { %p293_p7 = scmp.ge.s32.totalorder %s405_s15, 1  ;;  %p139_p8 = scmp.lt.s32.totalorder %s405_s15, 3 }
   0xc   : > { %p140_p9 = pnand %p293_p7, %p139_p8 }
   0xd   : > { %p162_p10 = scmp.lt.s32.totalorder (!%p140_p9), %s448_s16, 1  ;;  %s159_s17 = sand.u32 (!%p140_p9), 1, %s397_s13  }
   0xe   : > { %143 = sbr.rel (%p140_p9) target bundleno = 298 (0x12a), region = 32  ;;  %s294_s19 = sshll.u32 (!%p140_p9), %s159_s17, 3 }
   0xf   : > { %s298_s20 = sshll.u32 (!%p140_p9), %s448_s16, 3  ;;  %s161_s27 = scalar_lea.vmem (!%p140_p9), [#allocation2], %s294_s19 }
  0x10   : > { %s226_s26 = scalar_lea.hbm (!%p140_p9), %s530_s3, %s298_s20  ;;  %s228_s28 = sshll.u32 (!%p140_p9), %s161_s27, 4  ;;  %s229_s28 = int_to_ptr.vmem [resolvable:$true] %s228_s28 }
  0x11   : > { %s230_s29 = sshll.u32 (!%p140_p9), %s226_s26, 4  ;;  %s363_s7 = scalar_lea.hbm (!%p140_p9), %s530_s3, 16  ;;  %s231_s29 = int_to_ptr.hbm [resolvable:$true] %s230_s29 }
  0x13   : > { %v170_v0 = vld [vmem:[%s528_s1 + $0x18] sm:$0xff]  ;;  %v169_v1 = vld [vmem:[%s528_s1 + $0x10] sm:$0xff]  ;;  %v168_v2 = vld [vmem:[%s528_s1 + $0x8] sm:$0xff]  ;;  %s163_s30 = scalar_select %p162_p10, %s448_s16, 1  ;;  %vm175_vm0 = vcmask 261120  }
  0x14   : > { %191 = vmatpush.msra.mxu0 %v170_v0  ;;  %v167_v3 = vld [vmem:[%s528_s1] sm:$0xff]  ;;  %s216_s16 = scalar_lea.sflag [#allocation3], %s159_s17 }
  0x15   : > { %s295_s6 = sshll.u32 %s163_s30, 3  ;;  %v340_v5 = vld [vmem:[%s529_s2] ss:$0 sm:$0xff]  ;;  %s357_s30 = sshra.s32 %s231_s29, 4  ;;  %s358_s30 = int_to_ptr.hbm [resolvable:$true] %s357_s30 }
  0x16   : > { %192 = vmatpush.msra.mxu0 %v169_v1  ;;  %s165_s9 = scalar_lea.vmem %s527_s0, %s295_s6  ;;  %s359_s4 = scalar_lea.hbm %s358_s30, 8 }
  0x17   : > { %v166_v4 = vld [vmem:[%s165_s9] sm:$0xff]  ;;  %p360_p11 = scmp.ne.s32.totalorder %s358_s30, %s359_s4  ;;  %p364_p0 = scmp.lt.s32.totalorder %s358_s30, %s530_s3 }
  0x18   : > { %193 = vmatpush.msra.mxu0 %v168_v2  ;;  %p365_p1 = scmp.lt.s32.totalorder %s363_s7, %s359_s4 }
  0x19   : > { %p361_p12 = pnand %p360_p11, %p465_p5 }
  0x1a   : > { %194 = vmatpush.msra.mxu0 %v167_v3  ;;  %p366_p2 = por %p365_p1, %p364_p0 }
  0x1b   : > { %296 = vmatmul.msk.f32.vlgmr.msra.gmra.mxu0 %vm175_vm0, %v166_v4  ;;  %p362_p13 = pneg %p361_p12 }
  0x1d   : > { %p367_p3 = pnand %p366_p2, %p362_p13 }
  0x98   : > { %v196_v6 = vpop.f32.mrf.mxu0 }
  0x99   : > { %v197_v7 = vadd.f32 %v340_v5, %v196_v6 }
  0x9b   : > { %v199_v8 = vmul.f32 %v197_v7, %v197_v7 }
  0x9d   : > { %200 = vadd.xlane.f32.xlu0 %v199_v8 }
 0x110   : > { %v201_v9 = vpop.xlane.xlu0 %200 }
 0x111   : > { %v202_v10 = vmax.f32 %v201_v9, 1e-24 }
 0x113   : > { %341 = vrsqrt.f32 %v202_v10  ;;  %vm209_vm2 = vweird.f32 %v202_v10 }
 0x119   : > { %v342_v11 = vpop.eup %341 }
 0x11a   : > { %v204_v12 = vmul.f32 %v342_v11, %v202_v10  ;;  %vm210_vm1 = vweird.f32 %v342_v11 }
 0x11b   : > { %vm211_vm3 = vmor %vm209_vm2, %vm210_vm1 }
 0x11c   : > { %v205_v13 = vmul.f32 %v342_v11, %v204_v12 }
 0x11e   : > { %v206_v14 = vmul.f32 0.5, %v205_v13 }
 0x120   : > { %v207_v15 = vsub.f32 1.5, %v206_v14 }
 0x122   : > { %v208_v16 = vmul.f32 %v342_v11, %v207_v15 }
 0x124   : > { %v212_v17 = vsel %vm211_vm3, %v342_v11, %v208_v16 }
 0x125   : > { %v213_v18 = vmul.f32 %v212_v17, %v197_v7 }
 0x127   : > { %214 = vst [vmem:[%s161_s27] sm:$0xff] %v213_v18 }
 0x128   : > { %370 = shalt.err (!%p367_p3)
}
 0x129   : > { %301 = dma.vmem_to_hbm [thread:$0]  (%p465_p5), %s229_s28, 128, %s231_s29, %s216_s16  }
 0x12a PF: > { %p307_p4 = scmp.ge.s32.totalorder %s405_s15, 2  ;;  %s242_s10 = sand.u32 1, %s393_s12  }
 0x12b   : > { %s243_s11 = scalar_lea.sflag [#allocation3], %s242_s10 }
 0x12c   : > { %p304_p7 = pnand %p307_p4, %p469_p6 }
 0x12e   : > { %p305_p8 = pneg %p304_p7 }
 0x130   : > { %388 = dma.done.wait (%p305_p8), %s243_s11, 128  }
 0x131   : > { %390 = vsyncadd (%p305_p8), %s243_s11, 4294967168  ;;  %p13_p9 = scmp.ge.s32.totalorder %s452_s18, 4   ;;  %s533_s12 = smov %s397_s13 }
 0x132   : > { %s534_s13 = smov %s401_s14  ;;  %s535_s14 = smov %s463_s21 }
 0x133   : > { %s536_s15 = smov %s452_s18  ;;  %15 = sbr.rel (!%p13_p9) target bundleno = 3 (0x3), region = 67 }
 0x138   :  { %249 = vsyncpa [#allocation3], 1 }
 0x139   :  { %251 = vsyncpa [#allocation3 + $0x1], 1 }

</bundles_post_ra>
